<compile_context>
chip_gen: v6e
topology: v6e:2x2x1
jax: 0.10.0
libtpu: 0.0.40
codegen_flags: <defaults>
</compile_context>

<pallas_src>
from functools import partial

import jax
import jax.numpy as jnp
from jax.experimental import pallas as pl
from jax.experimental.pallas import tpu as pltpu


def _round_up(n, m):
    return ((n + m - 1) // m) * m


def conv_encoder_kernel(w_a_ref, w_g_ref, b_a_ref, b_g_ref, x_ref, o_ref,
                        x_acc, *, l_real):
    """Grid = (batch, layer); layer axis is the serial ("arbitrary") axis.

    w_a_ref: (1, Cp, 3*Cp) bf16   this layer's fused 3-tap weight, GLU 'a' half
    w_g_ref: (1, Cp, 3*Cp) bf16   this layer's fused 3-tap weight, GLU 'g' half
    b_a_ref: (1, Cp, 1)    f32    bias, 'a' half (broadcast over lanes = L)
    b_g_ref: (1, Cp, 1)    f32    bias, 'g' half
    x_ref  : (1, Cp, Lp)          padded NCL input block for this batch element
    o_ref  : (1, Cp, Lp)          padded NCL output block
    x_acc  : (Cp, Lp)      f32    persistent residual accumulator (VMEM scratch)
    """
    layer = pl.program_id(1)

    @pl.when(layer == 0)
    def _():
        x_acc[...] = x_ref[0].astype(jnp.float32)

    cp, lp = x_acc.shape
    x = x_acc[...]                                            # (Cp, Lp) f32

    # lane (position) index; built once per grid step
    col = jax.lax.broadcasted_iota(jnp.int32, (1, lp), 1)

    # kernel_size=3, padding=1 "same" conv via shifted copies along lanes.
    # Masks are against the REAL sequence length so padded columns never
    # contaminate real ones.
    x_prev = jnp.where(col == 0, 0.0, pltpu.roll(x, shift=1, axis=1))
    x_next = jnp.where(col == l_real - 1, 0.0, pltpu.roll(x, shift=lp - 1, axis=1))

    # Fuse the 3 taps into one K = 3*Cp contraction; feed the MXU bf16.
    x_cat = jnp.concatenate([x_prev, x, x_next], axis=0).astype(jnp.bfloat16)

    a = jnp.dot(w_a_ref[0], x_cat, preferred_element_type=jnp.float32) + b_a_ref[0]
    g = jnp.dot(w_g_ref[0], x_cat, preferred_element_type=jnp.float32) + b_g_ref[0]

    # GLU + residual, accumulated in f32
    x_acc[...] = x + a * jax.nn.sigmoid(g)

    @pl.when(layer == pl.num_programs(1) - 1)
    def _():
        o_ref[0] = x_acc[...].astype(o_ref.dtype)


def conv_encoder(x_ncl, w_oik, bias):
    """ConvEncoder forward.

    x_ncl: (B, C, L)               PyTorch-style NCL input
    w_oik: (num_layers, 2C, C, 3)  PyTorch Conv1d weight layout per layer
    bias : (num_layers, 2C)
    returns (B, C, L)
    """
    B, C, L = x_ncl.shape
    num_layers = w_oik.shape[0]

    Cp = _round_up(C, 16)     # sublane / bf16-packing alignment
    Lp = _round_up(L, 128)    # lane-dense blocks and stores

    # --- wrapper-side parameter re-layout (tiny, one-time) -------------------
    # (NL, 2C, C, 3) -> (NL, 2C, 3, C): K order must be [tap, in_channel] to
    # match x_cat = [x_prev; x; x_next].
    w_t = jnp.transpose(w_oik, (0, 1, 3, 2))
    w_t = jnp.pad(w_t, ((0, 0), (0, 0), (0, 0), (0, Cp - C)))       # pad in-ch
    w_a = jnp.pad(w_t[:, :C], ((0, 0), (0, Cp - C), (0, 0), (0, 0)))
    w_g = jnp.pad(w_t[:, C:], ((0, 0), (0, Cp - C), (0, 0), (0, 0)))
    w_a = w_a.reshape(num_layers, Cp, 3 * Cp).astype(jnp.bfloat16)
    w_g = w_g.reshape(num_layers, Cp, 3 * Cp).astype(jnp.bfloat16)

    b_a = jnp.pad(bias[:, :C], ((0, 0), (0, Cp - C))).reshape(num_layers, Cp, 1)
    b_g = jnp.pad(bias[:, C:], ((0, 0), (0, Cp - C))).reshape(num_layers, Cp, 1)
    b_a = b_a.astype(jnp.float32)
    b_g = b_g.astype(jnp.float32)

    # pad activations; padded channels/positions stay inert (see kernel notes)
    x_p = jnp.pad(x_ncl, ((0, 0), (0, Cp - C), (0, Lp - L)))

    kernel = partial(conv_encoder_kernel, l_real=L)

    out_p = pl.pallas_call(
        kernel,
        out_shape=jax.ShapeDtypeStruct((B, Cp, Lp), x_ncl.dtype),
        grid_spec=pltpu.PrefetchScalarGridSpec(
            num_scalar_prefetch=0,
            grid=(B, num_layers),                 # layer = serial (innermost)
            in_specs=[
                pl.BlockSpec((1, Cp, 3 * Cp), lambda b, l: (l, 0, 0)),  # W_a
                pl.BlockSpec((1, Cp, 3 * Cp), lambda b, l: (l, 0, 0)),  # W_g
                pl.BlockSpec((1, Cp, 1),      lambda b, l: (l, 0, 0)),  # b_a
                pl.BlockSpec((1, Cp, 1),      lambda b, l: (l, 0, 0)),  # b_g
                pl.BlockSpec((1, Cp, Lp),     lambda b, l: (b, 0, 0)),  # x
            ],
            out_specs=pl.BlockSpec((1, Cp, Lp), lambda b, l: (b, 0, 0)),
            scratch_shapes=[pltpu.VMEM((Cp, Lp), jnp.float32)],
        ),
        compiler_params=pltpu.CompilerParams(
            dimension_semantics=("parallel", "arbitrary"),
            # conservative explicit budget; re-derive per generation (v7x: 64 MiB phys)
            vmem_limit_bytes=32 * 1024 * 1024,
        ),
    )(w_a, w_g, b_a, b_g, x_p)

    return out_p[:, :C, :L]


def conv_encoder_reference(x_ncl, w_oik, bias):
    """Pure-JAX reference matching the PyTorch forward exactly (f32)."""
    src = x_ncl
    C = x_ncl.shape[1]
    num_layers = w_oik.shape[0]
    for i in range(num_layers):
        out = jax.lax.conv_general_dilated(
            src, w_oik[i],
            window_strides=(1,),
            padding=((1, 1),),
            dimension_numbers=("NCH", "OIH", "NCH"),
        )
        out = out + bias[i][None, :, None]
        a = out[:, :C]
        g = out[:, C:]
        src = src + a * jax.nn.sigmoid(g)
    return src


if __name__ == "__main__":
    # small shapes consistent with the module: nn.Conv1d operates on (B, C, L)
    B, C, L = 2, 4, 16
    num_layers = 3

    key = jax.random.PRNGKey(0)
    kx, kw, kb = jax.random.split(key, 3)

    x = jax.random.normal(kx, (B, C, L), dtype=jnp.float32)
    # deterministic synthetic parameters (PyTorch Conv1d weight shape: (2C, C, 3))
    w = 0.1 * jax.random.normal(kw, (num_layers, 2 * C, C, 3), dtype=jnp.float32)
    b = 0.1 * jax.random.normal(kb, (num_layers, 2 * C), dtype=jnp.float32)

    out = conv_encoder(x, w, b)
    out = jax.block_until_ready(out)

    ref = conv_encoder_reference(x, w, b)
    assert out.shape == (B, C, L)
    # tolerance relaxed vs the f32 reference because MXU inputs are bf16
    assert jnp.allclose(out, ref, atol=2e-2, rtol=2e-2), "mismatch vs reference"

    print("KERNEL_OK")
</pallas_src>

<mosaic_0001>
module attributes {stable_mosaic.version = 11 : i64} {
  func.func @conv_encoder_kernel(%arg0: i32, %arg1: i32, %arg2: memref<1x16x48xbf16, #tpu.memory_space<vmem>>, %arg3: memref<1x16x48xbf16, #tpu.memory_space<vmem>>, %arg4: memref<1x16x1xf32, #tpu.memory_space<vmem>>, %arg5: memref<1x16x1xf32, #tpu.memory_space<vmem>>, %arg6: memref<1x16x128xf32, #tpu.memory_space<vmem>>, %arg7: memref<1x16x128xf32, #tpu.memory_space<vmem>>, %arg8: memref<16x128xf32, #tpu.memory_space<vmem>>) attributes {dimension_semantics = [#tpu.dimension_semantics<parallel>, #tpu.dimension_semantics<arbitrary>], iteration_bounds = array<i64: 2, 3>, scalar_prefetch = 0 : i64, scratch_operands = 1 : i64, tpu.core_type = #tpu.core_type<tc>, window_params = [{transform_indices = @transform_0, window_bounds = array<i64: 1, 16, 48>}, {transform_indices = @transform_1, window_bounds = array<i64: 1, 16, 48>}, {transform_indices = @transform_2, window_bounds = array<i64: 1, 16, 1>}, {transform_indices = @transform_3, window_bounds = array<i64: 1, 16, 1>}, {transform_indices = @transform_4, window_bounds = array<i64: 1, 16, 128>}, {transform_indices = @transform_5, window_bounds = array<i64: 1, 16, 128>}]} {
    %c0_i32 = arith.constant 0 : i32
    %0 = arith.cmpi eq, %arg1, %c0_i32 : i32
    %1 = arith.extui %0 : i1 to i32
    %c0_i32_0 = arith.constant 0 : i32
    %2 = arith.cmpi ne, %1, %c0_i32_0 : i32
    scf.if %2 {
      %c0_22 = arith.constant 0 : index
      %c0_23 = arith.constant 0 : index
      %c0_24 = arith.constant 0 : index
      %46 = vector.load %arg6[%c0_22, %c0_23, %c0_24] : memref<1x16x128xf32, #tpu.memory_space<vmem>>, vector<1x16x128xf32>
      %47 = vector.shape_cast %46 : vector<1x16x128xf32> to vector<16x128xf32>
      %c0_25 = arith.constant 0 : index
      %c0_26 = arith.constant 0 : index
      %48 = vector.load %arg8[%c0_25, %c0_26] : memref<16x128xf32, #tpu.memory_space<vmem>>, vector<16x128xf32>
      tpu.vector_store %arg8[%c0_25, %c0_26], %47 {strides = array<i32>} : memref<16x128xf32, #tpu.memory_space<vmem>>, vector<16x128xf32>,
    } else {
    }
    %c0 = arith.constant 0 : index
    %c0_1 = arith.constant 0 : index
    %3 = vector.load %arg8[%c0, %c0_1] : memref<16x128xf32, #tpu.memory_space<vmem>>, vector<16x128xf32>
    %4 = tpu.iota {dimensions = array<i32: 1>} : vector<1x128xi32>
    %c0_i32_2 = arith.constant 0 : i32
    %5 = vector.broadcast %c0_i32_2 : i32 to vector<1x128xi32>
    %6 = arith.cmpi eq, %4, %5 : vector<1x128xi32>
    %c1_i32 = arith.constant 1 : i32
    %7 = tpu.dynamic_rotate %3 by %c1_i32 dim 1 : vector<16x128xf32>, i32 -> vector<16x128xf32>
    %cst = arith.constant 0.000000e+00 : f32
    %8 = vector.shape_cast %6 : vector<1x128xi1> to vector<1x128xi1>
    %9 = vector.broadcast %8 : vector<1x128xi1> to vector<16x128xi1>
    %10 = vector.broadcast %cst : f32 to vector<16x128xf32>
    %11 = arith.select %9, %10, %7 : vector<16x128xi1>, vector<16x128xf32>
    %c15_i32 = arith.constant 15 : i32
    %12 = vector.broadcast %c15_i32 : i32 to vector<1x128xi32>
    %13 = arith.cmpi eq, %4, %12 : vector<1x128xi32>
    %c127_i32 = arith.constant 127 : i32
    %14 = tpu.dynamic_rotate %3 by %c127_i32 dim 1 : vector<16x128xf32>, i32 -> vector<16x128xf32>
    %cst_3 = arith.constant 0.000000e+00 : f32
    %15 = vector.shape_cast %13 : vector<1x128xi1> to vector<1x128xi1>
    %16 = vector.broadcast %15 : vector<1x128xi1> to vector<16x128xi1>
    %17 = vector.broadcast %cst_3 : f32 to vector<16x128xf32>
    %18 = arith.select %16, %17, %14 : vector<16x128xi1>, vector<16x128xf32>
    %19 = tpu.concatenate %11, %3, %18 in 0 : vector<16x128xf32>, vector<16x128xf32>, vector<16x128xf32> -> vector<48x128xf32>
    %20 = arith.truncf %19 : vector<48x128xf32> to vector<48x128xbf16>
    %c0_4 = arith.constant 0 : index
    %c0_5 = arith.constant 0 : index
    %c0_6 = arith.constant 0 : index
    %21 = vector.load %arg2[%c0_4, %c0_5, %c0_6] : memref<1x16x48xbf16, #tpu.memory_space<vmem>>, vector<1x16x48xbf16>
    %22 = vector.shape_cast %21 : vector<1x16x48xbf16> to vector<16x48xbf16>
    %cst_7 = arith.constant dense<0.000000e+00> : vector<16x128xf32>
    %23 = tpu.matmul %22, %20, %cst_7 {dimension_numbers = #tpu.dot_dimension_numbers<[1], [0], [0], [1], [0, 0, 1, 1], [], []>} : vector<16x48xbf16>, vector<48x128xbf16>, vector<16x128xf32> -> vector<16x128xf32>
    %c0_8 = arith.constant 0 : index
    %c0_9 = arith.constant 0 : index
    %c0_10 = arith.constant 0 : index
    %24 = vector.load %arg4[%c0_8, %c0_9, %c0_10] : memref<1x16x1xf32, #tpu.memory_space<vmem>>, vector<1x16x1xf32>
    %25 = vector.shape_cast %24 : vector<1x16x1xf32> to vector<16x1xf32>
    %26 = vector.broadcast %25 : vector<16x1xf32> to vector<16x128xf32>
    %27 = arith.addf %23, %26 : vector<16x128xf32>
    %c0_11 = arith.constant 0 : index
    %c0_12 = arith.constant 0 : index
    %c0_13 = arith.constant 0 : index
    %28 = vector.load %arg3[%c0_11, %c0_12, %c0_13] : memref<1x16x48xbf16, #tpu.memory_space<vmem>>, vector<1x16x48xbf16>
    %29 = vector.shape_cast %28 : vector<1x16x48xbf16> to vector<16x48xbf16>
    %cst_14 = arith.constant dense<0.000000e+00> : vector<16x128xf32>
    %30 = tpu.matmul %29, %20, %cst_14 {dimension_numbers = #tpu.dot_dimension_numbers<[1], [0], [0], [1], [0, 0, 1, 1], [], []>} : vector<16x48xbf16>, vector<48x128xbf16>, vector<16x128xf32> -> vector<16x128xf32>
    %c0_15 = arith.constant 0 : index
    %c0_16 = arith.constant 0 : index
    %c0_17 = arith.constant 0 : index
    %31 = vector.load %arg5[%c0_15, %c0_16, %c0_17] : memref<1x16x1xf32, #tpu.memory_space<vmem>>, vector<1x16x1xf32>
    %32 = vector.shape_cast %31 : vector<1x16x1xf32> to vector<16x1xf32>
    %33 = vector.broadcast %32 : vector<16x1xf32> to vector<16x128xf32>
    %34 = arith.addf %30, %33 : vector<16x128xf32>
    %35 = arith.negf %34 : vector<16x128xf32>
    %36 = math.exp %35 : vector<16x128xf32>
    %cst_18 = arith.constant 1.000000e+00 : f32
    %37 = vector.broadcast %cst_18 : f32 to vector<16x128xf32>
    %38 = arith.addf %37, %36 : vector<16x128xf32>
    %39 = arith.divf %37, %38 : vector<16x128xf32>
    %40 = arith.mulf %27, %39 : vector<16x128xf32>
    %41 = arith.addf %3, %40 : vector<16x128xf32>
    %c0_19 = arith.constant 0 : index
    %c0_20 = arith.constant 0 : index
    %42 = vector.load %arg8[%c0_19, %c0_20] : memref<16x128xf32, #tpu.memory_space<vmem>>, vector<16x128xf32>
    tpu.vector_store %arg8[%c0_19, %c0_20], %41 {strides = array<i32>} : memref<16x128xf32, #tpu.memory_space<vmem>>, vector<16x128xf32>,
    %c2_i32 = arith.constant 2 : i32
    %43 = arith.cmpi eq, %arg1, %c2_i32 : i32
    %44 = arith.extui %43 : i1 to i32
    %c0_i32_21 = arith.constant 0 : i32
    %45 = arith.cmpi ne, %44, %c0_i32_21 : i32
    scf.if %45 {
      %c0_22 = arith.constant 0 : index
      %c0_23 = arith.constant 0 : index
      %46 = vector.load %arg8[%c0_22, %c0_23] : memref<16x128xf32, #tpu.memory_space<vmem>>, vector<16x128xf32>
      %c0_24 = arith.constant 0 : index
      %c0_25 = arith.constant 0 : index
      %c0_26 = arith.constant 0 : index
      %47 = vector.load %arg7[%c0_24, %c0_25, %c0_26] : memref<1x16x128xf32, #tpu.memory_space<vmem>>, vector<1x16x128xf32>
      %48 = vector.shape_cast %47 : vector<1x16x128xf32> to vector<16x128xf32>
      %49 = vector.shape_cast %46 : vector<16x128xf32> to vector<1x16x128xf32>
      tpu.vector_store %arg7[%c0_24, %c0_25, %c0_26], %49 {strides = array<i32>} : memref<1x16x128xf32, #tpu.memory_space<vmem>>, vector<1x16x128xf32>,
    } else {
    }
    return
  }
  func.func @transform_0(%arg0: i32, %arg1: i32) -> (i32, i32, i32) {
    %c0_i32 = arith.constant 0 : i32
    %c0_i32_0 = arith.constant 0 : i32
    %c0_i32_1 = arith.constant 0 : i32
    return %arg1, %c0_i32, %c0_i32_0 : i32, i32, i32
  }
  func.func @transform_1(%arg0: i32, %arg1: i32) -> (i32, i32, i32) {
    %c0_i32 = arith.constant 0 : i32
    %c0_i32_0 = arith.constant 0 : i32
    %c0_i32_1 = arith.constant 0 : i32
    return %arg1, %c0_i32, %c0_i32_0 : i32, i32, i32
  }
  func.func @transform_2(%arg0: i32, %arg1: i32) -> (i32, i32, i32) {
    %c0_i32 = arith.constant 0 : i32
    %c0_i32_0 = arith.constant 0 : i32
    %c0_i32_1 = arith.constant 0 : i32
    return %arg1, %c0_i32, %c0_i32_0 : i32, i32, i32
  }
  func.func @transform_3(%arg0: i32, %arg1: i32) -> (i32, i32, i32) {
    %c0_i32 = arith.constant 0 : i32
    %c0_i32_0 = arith.constant 0 : i32
    %c0_i32_1 = arith.constant 0 : i32
    return %arg1, %c0_i32, %c0_i32_0 : i32, i32, i32
  }
  func.func @transform_4(%arg0: i32, %arg1: i32) -> (i32, i32, i32) {
    %c0_i32 = arith.constant 0 : i32
    %c0_i32_0 = arith.constant 0 : i32
    %c0_i32_1 = arith.constant 0 : i32
    return %arg0, %c0_i32, %c0_i32_0 : i32, i32, i32
  }
  func.func @transform_5(%arg0: i32, %arg1: i32) -> (i32, i32, i32) {
    %c0_i32 = arith.constant 0 : i32
    %c0_i32_0 = arith.constant 0 : i32
    %c0_i32_1 = arith.constant 0 : i32
    return %arg0, %c0_i32, %c0_i32_0 : i32, i32, i32
  }
}

</mosaic_0001>

<bundles_post_ra>
// kernel: tpu_custom_call.1
= control target key start
LH: loop header
LB: loop body
LE: loop exit
PB: predicated region body
PF: predicated region fallthrough
CT: control target
= control target key end

     0   :  { %10 = vsyncpa [#allocation4], 0  ;;  %s1133_s0 = inlined_call_operand.vmem [shape: bf16[3,16,48], index: 0, kind: input, shape index: {}]   ;;  %s1134_s1 = inlined_call_operand.vmem [shape: bf16[3,16,48], index: 1, kind: input, shape index: {}]   ;;  %s1135_s2 = inlined_call_operand.vmem [shape: f32[3,16,1], index: 2, kind: input, shape index: {}]   ;;  %s1136_s3 = inlined_call_operand.vmem [shape: f32[3,16,1], index: 3, kind: input, shape index: {}]   ;;  %s1137_s4 = inlined_call_operand.vmem [shape: f32[2,16,128], index: 4, kind: input, shape index: {}]   ;;  %s1138_s5 = inlined_call_operand.hbm [shape: f32[2,16,128], index: 5, kind: output, shape index: {}]  }
   0x1   :  { %12 = vsyncpa [#allocation4 + $0x1], 0  ;;  %s954_s18 = smov 0   ;;  %s956_s19 = smov 0  }
   0x2   :  { %s958_s20 = smov 0   ;;  %s960_s21 = smov 0  }
   0x3   :  { %s962_s22 = smov 0   ;;  %s964_s23 = smov 0  }
   0x4   :  { %s966_s24 = smov 0   ;;  %s968_s25 = smov 0  }
   0x5 LB: > { %1145 = sst [smem:[#allocation6_spill]] %s894_s20  ;;  %s637_s26 = sadd.s32 4294967295, %s914_s25   ;;  %s914_s25 = sphi %s968_s25, %s18_s25   ;;  %s910_s24 = sphi %s966_s24, %s1161_s24   ;;  %s906_s23 = sphi %s964_s23, %s1160_s23   ;;  %s902_s22 = sphi %s962_s22, %s1159_s22   ;;  %s898_s21 = sphi %s960_s21, %s1158_s21   ;;  %s894_s20 = sphi %s958_s20, %s1157_s20   ;;  %s890_s19 = sphi %s956_s19, %s1163_s19   ;;  %s886_s18 = sphi %s954_s18, %s1162_s18  }
   0x6   : > { %1146 = sst [smem:[#allocation7_spill]] %s906_s23  ;;  %s638_s27 = sadd.s32 4294967294, %s914_s25  }
   0x7   : > { %1147 = sst [smem:[#allocation8_spill]] %s910_s24  ;;  %s27_s28 = sadd.s32 1, %s906_s23 }
   0x8   : > { %p28_p0 = scmp.ge.s32.totalorder %s27_s28, 3  ;;  %s30_s29 = sadd.s32 1, %s910_s24 }
   0x9   : > { %p177_p1 = scmp.ne.s32.totalorder %s894_s20, %s890_s19  ;;  %p178_p2 = scmp.eq.s32.totalorder %s637_s26, 5 }
   0xa   : > { %s1165_s28 = smov (%p28_p0, %s27_s28), 0  ;;  %s1167_s29 = smov (!%p28_p0, %s30_s29), %s910_s24 }
   0xb   : > { %1148 = sst [smem:[#allocation9_spill]] %s1165_s28  ;;  %p1003_p3 = por %p178_p2, %p177_p1 }
   0xc   : > { %p183_p4 = scmp.ne.s32.totalorder %s890_s19, %s886_s18  ;;  %p32_p5 = scmp.ge.s32.totalorder %s1167_s29, 2 }
   0xd   : > { %p184_p6 = scmp.eq.s32.totalorder %s638_s27, 5  ;;  %p641_p7 = scmp.ge.s32.totalorder %s914_s25, 1 }
   0xe   : > { %p242_p8 = scmp.lt.s32.totalorder %s914_s25, 7  ;;  %s1169_s29 = smov (%p32_p5, %s1167_s29), 0 }
   0xf   : > { %1150 = sst [smem:[#allocation10_spill]] %s1169_s29  ;;  %p1013_p9 = por %p184_p6, %p183_p4 }
  0x10   : > { %p243_p10 = pnand %p641_p7, %p242_p8  ;;  %s164_s7 = ssub.s32 %s910_s24, %s1169_s29 }
  0x11   : > { %s1151_s6 = scalar_select %p1013_p9, 1, 0 }
  0x12   : > { %s167_s8 = sadd.s32 1, %s894_s20  ;;  %p165_p11 = scmp.eq.s32.totalorder %s164_s7, 0 }
  0x13   : > { %1152 = sst [smem:[#allocation11_spill]] %s1151_s6  ;;  %246 = sbr.rel (%p243_p10) target bundleno = 446 (0x1be), region = 40 }
  0x14   : > { %s1021_s9 = scalar_select %p165_p11, %s894_s20, %s167_s8  }
  0x15   : > { %s1141_s10 = sand.u32 (!%p243_p10), 1, %s890_s19   ;;  %p290_p12 = scmp.lt.s32.totalorder (!%p243_p10), %s898_s21, 2 }
  0x16   : > { %1153 = sst [smem:[#allocation12_spill]] %s1021_s9  ;;  %s642_s11 = sshll.u32 (!%p243_p10), %s1141_s10, 4 }
  0x17   : > { %p310_p13 = scmp.lt.s32.totalorder (!%p243_p10), %s902_s22, 1  ;;  %s1051_s17 = scalar_lea.vmem (!%p243_p10), [#allocation3], %s642_s11 }
  0x18   : > { %s291_s12 = scalar_select %p290_p12, %s898_s21, 2 }
  0x19   : > { %s311_s13 = scalar_select %p310_p13, %s902_s22, 1 }
  0x1a   : > { %s686_s14 = sshll.u32 %s291_s12, 3  ;;  %s688_s15 = sshll.u32 %s291_s12, 4 }
  0x1b   : > { %s1033_s26 = scalar_lea.vmem %s1133_s0, %s686_s14  ;;  %s1038_s8 = scalar_lea.vmem %s1134_s1, %s686_s14 }
  0x1c   : > { %s1043_s24 = scalar_lea.vmem %s1135_s2, %s688_s15  ;;  %s309_s9 = scalar_lea.vmem %s1136_s3, %s688_s15 }
  0x1d   : > { %s690_s12 = sshll.u32 %s311_s13, 4  ;;  %p653_p0 = scmp.ne.s32.totalorder %s898_s21, 0 }
  0x1e   : > { %s314_s16 = scalar_lea.vmem %s1137_s4, %s690_s12 }
  0x1f   : > { %319 = sbr.rel (%p653_p0) target bundleno = 38 (0x26), region = 44 }
  0x24   : > { %v320_v0 = vld [vmem:[%s314_s16] sm:$0xff]  ;;  %v321_v1 = vld [vmem:[%s314_s16 + $0x8] sm:$0xff] }
  0x25   : > { %322 = vst [vmem:[#allocation2] sm:$0xff] %v320_v0  ;;  %323 = vst [vmem:[#allocation2 + $0x8] sm:$0xff] %v321_v1 }
  0x26 PF: > { %v916_v5 = vmov 0.0   ;;  %s917_s20 = smov 127   ;;  %vm918_vm0 = vmmov 0   ;;  %v415_v6 = vld [vmem:[%s309_s9] sm:$0xff]  ;;  %v919_v7 = vmov 0   ;;  %s920_s23 = smov 1   ;;  %v326_v11 = vlaneseq }
  0x27   : > { %702 = vmatprep.subr.bf16.mxu0 %v916_v5  ;;  %712 = vmatprep.subr.bf16.mxu1 %v916_v5  ;;  %v416_v8 = vld [vmem:[%s309_s9 + $0x8] sm:$0xff]  ;;  %v351_v9 = vld [vmem:[%s1043_s24] sm:$0xff]  ;;  %vm368_vm5 = vcmask 392192   ;;  %p680_p1 = scmp.ne.s32.totalorder %s898_s21, 2 }
  0x28   : > { %708 = vmatprep.mubr.msk.bf16.mxu0 %vm918_vm0, %v916_v5  ;;  %718 = vmatprep.mubr.msk.bf16.mxu1 %vm918_vm0, %v916_v5  ;;  %v352_v10 = vld [vmem:[%s1043_s24 + $0x8] sm:$0xff]  ;;  %v327_v12 = vand.u32 127, %v326_v11  ;;  %v812_v22 = vld [vmem:[%s1033_s26] sm:$0xff]  }
  0x29   : > { %810 = vset.pattern.permute.xlu1 %v919_v7  ;;  %811 = vset.pattern.permute.xlu0 %v919_v7  ;;  %v813_v23 = vld [vmem:[%s1038_s8] sm:$0xff]  }
  0x2a   : > { %419 = vperm.xlu1 %810, %v415_v6   ;;  %vm692_vm1 = vcmp.ne.s32.totalorder %v327_v12, 15  ;;  %vm693_vm3 = vcmp.ne.s32.totalorder %v327_v12, 0 }
  0x2b   : > { %vm657_vm2 = vmpackc.low %vm692_vm1, %vm692_vm1 }
  0x2c   : > { %v1054_v2 = vld [vmem:[#allocation2] sm:$0xff]  ;;  %v1056_v3 = vld [vmem:[#allocation2 + $0x8] sm:$0xff]  ;;  %vm662_vm4 = vmpackc.low %vm693_vm3, %vm693_vm3 }
  0x2d   : > { %v800_v4 = vpack.i.bf16 %v1056_v3, %v1054_v2  ;;  %v347_v20 = vpack.c.bf16 %v1056_v3, %v1054_v2 }
  0x2e   : > { %424 = vperm.xlu1 %810, %v416_v8  }
  0x2f   : > { %801 = vrot.lane.b32.xlu0 %v800_v4, %s917_s20 }
  0x32   : > { %360 = vperm.xlu1 %810, %v352_v10  }
  0x33   : > { %806 = vrot.lane.b32.xlu0 %v800_v4, %s920_s23 }
  0x37   : > { %355 = vperm.xlu0 %811, %v351_v9  }
  0xa1   : > { %v802_v13 = vpop.permute.xlu0 %801 }
  0xa2   : > { %v804_v14 = vunpack.i.h.bf16 %v802_v13  ;;  %v803_v15 = vunpack.i.l.bf16 %v802_v13 }
  0xa4   : > { %v658_v16 = vpack.c.bf16 %v804_v14, %v803_v15 }
  0xa5   : > { %v807_v17 = vpop.permute.xlu0 %806  ;;  %v420_v24 = vpop.permute.xlu1 %419 }
  0xa6   : > { %703 = vmatpush3.bf16.msk.msra.mxu0 %vm657_vm2, %v658_v16  ;;  %713 = vmatpush3.bf16.msk.msra.mxu1 %vm657_vm2, %v658_v16  ;;  %v809_v18 = vunpack.i.h.bf16 %v807_v17  ;;  %v808_v19 = vunpack.i.l.bf16 %v807_v17 }
  0xa7   : > { %704 = vmatprep.subr.bf16.mxu0 %v916_v5  ;;  %714 = vmatprep.subr.bf16.mxu1 %v916_v5 }
  0xa8   : > { %v663_v21 = vpack.c.bf16 %v809_v18, %v808_v19 }
  0xa9   : > { %v425_v30 = vpop.permute.xlu1 %424 }
  0xaa   : > { %705 = vmatpush3.bf16.msra.mxu0 %v347_v20  ;;  %715 = vmatpush3.bf16.msra.mxu1 %v347_v20 }
  0xab   : > { %706 = vmatprep.subr.bf16.mxu0 %v916_v5  ;;  %716 = vmatprep.subr.bf16.mxu1 %v916_v5 }
  0xad   : > { %v361_v46 = vpop.permute.xlu1 %360 }
  0xae   : > { %707 = vmatpush3.bf16.msk.msra.mxu0 %vm662_vm4, %v663_v21  ;;  %717 = vmatpush3.bf16.msk.msra.mxu1 %vm662_vm4, %v663_v21 }
  0xb1   : > { %709 = vmatmul.mubr.msk.bf16.vlgmr.msra.gmra.mxu0 %vm368_vm5, %v812_v22  ;;  %719 = vmatmul.mubr.msk.bf16.vlgmr.msra.gmra.mxu1 %vm368_vm5, %v813_v23 }
  0xb2   : > { %v356_v42 = vpop.permute.xlu0 %355 }
 0x171   : > { %v406_v25 = vpop.f32.mrf.mxu0  ;;  %v469_v26 = vpop.f32.mrf.mxu1 }
 0x172   : > { %v470_v27 = vadd.f32 %v469_v26, %v420_v24  ;;  %v407_v43 = vadd.f32 %v406_v25, %v356_v42 }
 0x173   : > { %v710_v28 = vpop.f32.mrf.mxu0  ;;  %v720_v29 = vpop.f32.mrf.mxu1 }
 0x174   : > { %v678_v31 = vmul.f32 -1.442695, %v470_v27 }
 0x175   : > { %v409_v32 = vpop.f32.mrf.mxu0  ;;  %v472_v33 = vpop.f32.mrf.mxu1 }
 0x176   : > { %814 = vpow2.f32 %v678_v31  ;;  %v473_v34 = vadd.f32 %v472_v33, %v425_v30  ;;  %v410_v47 = vadd.f32 %v409_v32, %v361_v46 }
 0x177   : > { %v721_v35 = vpop.f32.mrf.mxu1  ;;  %v711_v36 = vpop.f32.mrf.mxu0 }
 0x178   : > { %v679_v37 = vmul.f32 -1.442695, %v473_v34 }
 0x17a   : > { %816 = vpow2.f32 %v679_v37 }
 0x183   : > { %v815_v38 = vpop.eup %814 }
 0x184   : > { %v482_v39 = vadd.f32 1.0, %v815_v38 }
 0x186   : > { %818 = vrcp.f32 %v482_v39 }
 0x187   : > { %v817_v40 = vpop.eup %816 }
 0x188   : > { %v483_v41 = vadd.f32 1.0, %v817_v40 }
 0x18a   : > { %820 = vrcp.f32 %v483_v41 }
 0x193   : > { %v819_v44 = vpop.eup %818 }
 0x194   : > { %v488_v45 = vmul.f32 %v819_v44, %v407_v43 }
 0x196   : > { %v490_v48 = vadd.f32 %v488_v45, %v1054_v2 }
 0x197   : > { %v821_v49 = vpop.eup %820 }
 0x198   : > { %v489_v50 = vmul.f32 %v821_v49, %v410_v47  ;;  %492 = vst [vmem:[#allocation2] sm:$0xff] %v490_v48  ;;  %497 = sbr.rel (%p680_p1) target bundleno = 421 (0x1a5), region = 48 }
 0x19a   : > { %v491_v51 = vadd.f32 %v489_v50, %v1056_v3 }
 0x19c   : > { %493 = vst [vmem:[#allocation2 + $0x8] sm:$0xff] %v491_v51 }
 0x19f   : > { %v498_v52 = vld [vmem:[#allocation2] sm:$0xff] }
 0x1a0   : > { %500 = vst [vmem:[%s1051_s17] sm:$0xff] %v498_v52 }
 0x1a3   : > { %v499_v53 = vld [vmem:[#allocation2 + $0x8] sm:$0xff] }
 0x1a4   : > { %501 = vst [vmem:[%s1051_s17 + $0x8] sm:$0xff] %v499_v53 }
 0x1a5 PF: > { %s691_s24 = sshll.u32 %s902_s22, 8  ;;  %s516_s9 = sshll.u32 %s1051_s17, 4  ;;  %s1078_s9 = int_to_ptr.vmem [resolvable:$true] %s516_s9 }
 0x1a6   : > { %s1075_s6 = scalar_lea.hbm %s1138_s5, %s691_s24  ;;  %s1154_s21 = sand.u32 1, %s890_s19  }
 0x1a7   : > { %s1082_s10 = scalar_lea.sflag [#allocation4], %s1154_s21  ;;  %s822_s11 = scalar_lea.vmem %s1078_s9, 256 }
 0x1a8   : > { %p823_p2 = scmp.ne.s32.totalorder %s1078_s9, %s822_s11  ;;  %s921_s22 = smov [#allocation3]  }
 0x1a9   : > { %s826_s13 = sshll.u32 %s921_s22, 4  ;;  %s827_s13 = int_to_ptr.vmem [resolvable:$false] %s826_s13 }
 0x1aa   : > { %p824_p4 = pnand %p823_p2, %p1003_p3  ;;  %s828_s14 = scalar_lea.vmem %s827_s13, 512 }
 0x1ab   : > { %p829_p6 = scmp.lt.s32.totalorder %s1078_s9, %s827_s13  ;;  %p830_p7 = scmp.lt.s32.totalorder %s828_s14, %s822_s11 }
 0x1ac   : > { %p825_p5 = pneg %p824_p4 }
 0x1ad   : > { %p831_p8 = por %p830_p7, %p829_p6 }
 0x1af   : > { %p832_p10 = pnand %p831_p8, %p825_p5 }
 0x1b1   : > { %835 = shalt.err (!%p832_p10)
}
 0x1b2   : > { %s836_s15 = scalar_lea.hbm %s1075_s6, 256  ;;  %s840_s7 = scalar_lea.hbm %s1138_s5, 512 }
 0x1b3   : > { %p837_p11 = scmp.ne.s32.totalorder %s1075_s6, %s836_s15  ;;  %p841_p0 = scmp.lt.s32.totalorder %s1075_s6, %s1138_s5 }
 0x1b4   : > { %p842_p1 = scmp.lt.s32.totalorder %s840_s7, %s836_s15 }
 0x1b5   : > { %p838_p12 = pnand %p837_p11, %p1003_p3 }
 0x1b6   : > { %p843_p2 = por %p842_p1, %p841_p0 }
 0x1b7   : > { %p839_p13 = pneg %p838_p12 }
 0x1b9   : > { %p844_p4 = pnand %p843_p2, %p839_p13 }
 0x1bb   : > { %847 = shalt.err (!%p844_p4)
}
 0x1bc   : > { %s922_s16 = smov 128   ;;  %s923_s17 = smov 8  }
 0x1bd   : > { %722 = dma.vmem_to_hbm [thread:$0]  (%p1003_p3), %s1078_s9, 256, %s1075_s6, %s1082_s10, %s922_s16, %s922_s16, %s923_s17  }
 0x1be PF: > { %p728_p5 = scmp.ge.s32.totalorder %s914_s25, 2  ;;  %s531_s23 = sand.u32 1, %s886_s18  }
 0x1bf   : > { %s532_s24 = scalar_lea.sflag [#allocation4], %s531_s23 }
 0x1c0   : > { %p725_p6 = pnand %p728_p5, %p1013_p9 }
 0x1c2   : > { %p726_p7 = pneg %p725_p6 }
 0x1c4   : > { %881 = dma.done.wait (%p726_p7), %s532_s24, 256  }
 0x1c5   : > { %883 = vsyncadd (%p726_p7), %s532_s24, 4294967040  ;;  %s18_s25 = sadd.s32 1, %s914_s25   ;;  %s1156_s28 = sld [smem:[#allocation6_spill]] }
 0x1c6   : > { %p15_p8 = scmp.ge.s32.totalorder %s18_s25, 8   ;;  %s1157_s20 = sld [smem:[#allocation12_spill]] }
 0x1c7   : > { %s1158_s21 = sld [smem:[#allocation7_spill]]  ;;  %s1162_s18 = smov %s890_s19 }
 0x1c8   : > { %s1159_s22 = sld [smem:[#allocation8_spill]]  ;;  %17 = sbr.rel (!%p15_p8) target bundleno = 5 (0x5), region = 95 }
 0x1c9   : > { %s1160_s23 = sld [smem:[#allocation9_spill]] }
 0x1ca   : > { %s1161_s24 = sld [smem:[#allocation10_spill]] }
 0x1cb   : > { %s1163_s19 = smov %s1156_s28 }
 0x1cd   :  { %537 = vsyncpa [#allocation4], 1 }
 0x1ce   :  { %539 = vsyncpa [#allocation4 + $0x1], 1 }

</bundles_post_ra>
